<compile_context>
chip_gen: v6e
topology: v6e:2x2x1
jax: 0.10.0
libtpu: 0.0.40
codegen_flags: <defaults>
</compile_context>

<pallas_src>
import functools

import jax
import jax.numpy as jnp
from jax.experimental import pallas as pl
from jax.experimental.pallas import tpu as pltpu

EPS = 1e-5          # PyTorch BatchNorm default eps
C_IN = 3
C_MID = 12
C_OUT = 18
C_PAD = 24          # C_OUT rounded up to a full sublane multiple
LANE = 128


def _round_up(n, m):
    return ((n + m - 1) // m) * m


def _fused_kernel(p_true, x_ref, par_ref, o_ref):
    """Layout: channels on sublanes, flattened padded pixels on lanes.

    x_ref  : (4, P)  VMEM  rows 0..2 = input channels (spatially zero-padded
                           by 2), row 3 = conv1 "interior" mask
    par_ref: (24, 9) VMEM  cols 0..2 = (w1@w2)[k, c], col 3 = b1@w2, col 4 = b2,
                           col 5 = g1, col 6 = be1, col 7 = g2/3, col 8 = be2/3
                           (rows 18..23 are zero)
    o_ref  : (18, P) VMEM  fused output (lane-dense)
    """
    P = x_ref.shape[1]

    # Valid-pixel mask (zeros on the lane-padding tail), built from a lane iota.
    pidx = jax.lax.broadcasted_iota(jnp.int32, (1, P), 1)
    valid = (pidx < p_true).astype(jnp.float32)                       # (1, P)

    # ---- composed conv1(conv2) as ONE 1x1 conv over 4 input rows ----------
    #   acc[c, p] = b2[c]*valid[p] + bm[c]*inner[p] + sum_k W_eff[k,c]*x[k,p]
    acc = par_ref[:, C_IN + 1:C_IN + 2] * valid                       # (24, P)
    for k in range(C_IN + 1):                 # 3 channel rows + interior mask
        acc = acc + par_ref[:, k:k + 1] * x_ref[k:k + 1, :]

    inv_n = 1.0 / float(p_true)

    # ---- bn1 (training-mode batch stats, biased variance), one-pass sums ---
    s1 = jnp.sum(acc, axis=1, keepdims=True)
    s2 = jnp.sum(acc * acc, axis=1, keepdims=True)
    m1 = s1 * inv_n
    var1 = s2 * inv_n - m1 * m1
    scale1 = jax.lax.rsqrt(var1 + EPS) * par_ref[:, 5:6]
    v3 = (acc - m1) * scale1 + par_ref[:, 6:7]

    # ---- elementwise chain: v3 * clamp_max(v3 - 3, 6) ----------------------
    v6 = (v3 * jnp.minimum(v3 - 3.0, 6.0)) * valid   # zero the lane-pad tail

    # ---- bn2 (g2/be2 already carry the trailing /3) ------------------------
    t1 = jnp.sum(v6, axis=1, keepdims=True)
    t2 = jnp.sum(v6 * v6, axis=1, keepdims=True)
    m2 = t1 * inv_n
    var2 = t2 * inv_n - m2 * m2
    scale2 = jax.lax.rsqrt(var2 + EPS) * par_ref[:, 7:8]
    out = (v6 - m2) * scale2 + par_ref[:, 8:9]

    o_ref[...] = out[:C_OUT, :].astype(o_ref.dtype)


def model_forward(x_nchw, params):
    w1, b1, w2, b2, g1, be1, g2, be2 = params
    N, C, H, W = x_nchw.shape
    H2, W2 = H + 4, W + 4                    # after conv1 pad=1 then conv2 pad=1
    p_true = N * H2 * W2
    P = _round_up(p_true, LANE)

    # Input: zero-pad spatially by 2 (both convs' padding), channels-first,
    # flatten pixels onto the lane axis, lane-pad to a multiple of 128.
    xp = jnp.pad(x_nchw, ((0, 0), (0, 0), (2, 2), (2, 2)))            # (N,3,H2,W2)
    xt = jnp.transpose(xp, (1, 0, 2, 3)).reshape(C_IN, p_true)        # (3, p_true)

    # Interior mask = the (H+2)x(W+2) region of the (H+4)x(W+4) grid where
    # conv1 actually produced output; its weight column is b1 @ w2.
    interior = jnp.zeros((H2, W2), jnp.float32).at[1:-1, 1:-1].set(1.0)
    inmask = jnp.tile(interior.reshape(-1), (N,)).reshape(1, p_true)

    x_aug = jnp.concatenate([xt, inmask], axis=0)                     # (4, p_true)
    x_aug = jnp.pad(x_aug, ((0, 0), (0, P - p_true)))                 # (4, P)

    # Compose the two 1x1 convs; pack all per-channel parameters into one small
    # VMEM operand whose columns lane-broadcast inside the kernel.
    w_eff = w1 @ w2                                                   # (3, 18)
    bm = b1 @ w2                                                      # (18,)
    par = jnp.zeros((C_PAD, 9), jnp.float32)
    par = par.at[:C_OUT, 0:C_IN].set(w_eff.T)
    par = par.at[:C_OUT, C_IN].set(bm)
    par = par.at[:C_OUT, C_IN + 1].set(b2)
    par = par.at[:C_OUT, 5].set(g1)
    par = par.at[:C_OUT, 6].set(be1)
    par = par.at[:C_OUT, 7].set(g2 / 3.0)       # fold the trailing /3 into bn2
    par = par.at[:C_OUT, 8].set(be2 / 3.0)

    kernel = functools.partial(_fused_kernel, p_true)
    out_flat = pl.pallas_call(
        kernel,
        out_shape=jax.ShapeDtypeStruct((C_OUT, P), jnp.float32),
        in_specs=[
            pl.BlockSpec(memory_space=pltpu.MemorySpace.VMEM),
            pl.BlockSpec(memory_space=pltpu.MemorySpace.VMEM),
        ],
        out_specs=pl.BlockSpec(memory_space=pltpu.MemorySpace.VMEM),
        compiler_params=pltpu.CompilerParams(
            vmem_limit_bytes=32 * 1024 * 1024),
    )(x_aug, par)

    # NOTE: the slice to p_true is load-bearing (padded lanes hold bn2 affine
    # values, not zeros).
    out = out_flat[:, :p_true].reshape(C_OUT, N, H2, W2)
    return jnp.transpose(out, (1, 0, 2, 3))                           # NCHW


def reference_forward(x_nchw, params):
    """Pure-JAX reference mirroring the (repaired) PyTorch semantics."""
    w1, b1, w2, b2, g1, be1, g2, be2 = params
    x = jnp.transpose(x_nchw, (0, 2, 3, 1))
    xp = jnp.pad(x, ((0, 0), (1, 1), (1, 1), (0, 0)))
    v1 = jnp.einsum("nhwc,cd->nhwd", xp, w1) + b1
    v1p = jnp.pad(v1, ((0, 0), (1, 1), (1, 1), (0, 0)))
    v2 = jnp.einsum("nhwc,cd->nhwd", v1p, w2) + b2

    def bn(v, g, be):
        m = jnp.mean(v, axis=(0, 1, 2), keepdims=True)
        var = jnp.mean((v - m) ** 2, axis=(0, 1, 2), keepdims=True)
        return (v - m) * jax.lax.rsqrt(var + EPS) * g + be

    v3 = bn(v2, g1, be1)
    v5 = jnp.minimum(v3 - 3.0, 6.0)
    v6 = v3 * v5
    v8 = bn(v6, g2, be2) / 3.0
    return jnp.transpose(v8, (0, 3, 1, 2))


def make_params():
    k = jax.random.PRNGKey(42)
    k1, k2, k3, k4 = jax.random.split(k, 4)
    # conv weights stored as (Cin, Cout); PyTorch stores (Cout, Cin, 1, 1)
    w1 = jax.random.normal(k1, (C_IN, C_MID), jnp.float32) * 0.2
    b1 = jax.random.normal(k2, (C_MID,), jnp.float32) * 0.1
    w2 = jax.random.normal(k3, (C_MID, C_OUT), jnp.float32) * 0.2
    b2 = jax.random.normal(k4, (C_OUT,), jnp.float32) * 0.1
    # BatchNorm affine params: PyTorch default init (weight=1, bias=0)
    g1 = jnp.ones((C_OUT,), jnp.float32)
    be1 = jnp.zeros((C_OUT,), jnp.float32)
    g2 = jnp.ones((C_OUT,), jnp.float32)
    be2 = jnp.zeros((C_OUT,), jnp.float32)
    return (w1, b1, w2, b2, g1, be1, g2, be2)


if __name__ == "__main__":
    # Small shape consistent with the module: Cin=3 required; batch=2, 16x16 spatial.
    x = jax.random.normal(jax.random.PRNGKey(0), (2, 3, 16, 16), jnp.float32)
    params = make_params()

    fwd = jax.jit(model_forward)
    out = jax.block_until_ready(fwd(x, params))

    ref = reference_forward(x, params)
    assert out.shape == (2, 18, 20, 20), out.shape
    err = float(jnp.max(jnp.abs(out - ref)))
    assert err < 2e-4, err

    print("KERNEL_OK")
</pallas_src>

<mosaic_0001>
module attributes {stable_mosaic.version = 11 : i64} {
  func.func @_fused_kernel(%arg0: memref<4x896xf32, #tpu.memory_space<vmem>>, %arg1: memref<24x9xf32, #tpu.memory_space<vmem>>, %arg2: memref<18x896xf32, #tpu.memory_space<vmem>>) attributes {dimension_semantics = [], scalar_prefetch = 0 : i64, scratch_operands = 0 : i64, tpu.core_type = #tpu.core_type<tc>} {
    %0 = tpu.iota {dimensions = array<i32: 1>} : vector<1x896xi32>
    %c800_i32 = arith.constant 800 : i32
    %1 = vector.broadcast %c800_i32 : i32 to vector<1x896xi32>
    %2 = arith.cmpi slt, %0, %1 : vector<1x896xi32>
    %3 = arith.extui %2 : vector<1x896xi1> to vector<1x896xi32>
    %4 = arith.sitofp %3 : vector<1x896xi32> to vector<1x896xf32>
    %c0 = arith.constant 0 : index
    %c4 = arith.constant 4 : index
    %5 = vector.load %arg1[%c0, %c4] : memref<24x9xf32, #tpu.memory_space<vmem>>, vector<24x1xf32>
    %6 = vector.broadcast %5 : vector<24x1xf32> to vector<24x896xf32>
    %7 = vector.broadcast %4 : vector<1x896xf32> to vector<24x896xf32>
    %8 = arith.mulf %6, %7 : vector<24x896xf32>
    %c0_0 = arith.constant 0 : index
    %c0_1 = arith.constant 0 : index
    %9 = vector.load %arg1[%c0_0, %c0_1] : memref<24x9xf32, #tpu.memory_space<vmem>>, vector<24x1xf32>
    %c0_2 = arith.constant 0 : index
    %c0_3 = arith.constant 0 : index
    %10 = vector.load %arg0[%c0_2, %c0_3] : memref<4x896xf32, #tpu.memory_space<vmem>>, vector<1x896xf32>
    %11 = vector.broadcast %9 : vector<24x1xf32> to vector<24x896xf32>
    %12 = vector.broadcast %10 : vector<1x896xf32> to vector<24x896xf32>
    %13 = arith.mulf %11, %12 : vector<24x896xf32>
    %14 = arith.addf %8, %13 : vector<24x896xf32>
    %c0_4 = arith.constant 0 : index
    %c1 = arith.constant 1 : index
    %15 = vector.load %arg1[%c0_4, %c1] : memref<24x9xf32, #tpu.memory_space<vmem>>, vector<24x1xf32>
    %c1_5 = arith.constant 1 : index
    %c0_6 = arith.constant 0 : index
    %16 = vector.load %arg0[%c1_5, %c0_6] : memref<4x896xf32, #tpu.memory_space<vmem>>, vector<1x896xf32>
    %17 = vector.broadcast %15 : vector<24x1xf32> to vector<24x896xf32>
    %18 = vector.broadcast %16 : vector<1x896xf32> to vector<24x896xf32>
    %19 = arith.mulf %17, %18 : vector<24x896xf32>
    %20 = arith.addf %14, %19 : vector<24x896xf32>
    %c0_7 = arith.constant 0 : index
    %c2 = arith.constant 2 : index
    %21 = vector.load %arg1[%c0_7, %c2] : memref<24x9xf32, #tpu.memory_space<vmem>>, vector<24x1xf32>
    %c2_8 = arith.constant 2 : index
    %c0_9 = arith.constant 0 : index
    %22 = vector.load %arg0[%c2_8, %c0_9] : memref<4x896xf32, #tpu.memory_space<vmem>>, vector<1x896xf32>
    %23 = vector.broadcast %21 : vector<24x1xf32> to vector<24x896xf32>
    %24 = vector.broadcast %22 : vector<1x896xf32> to vector<24x896xf32>
    %25 = arith.mulf %23, %24 : vector<24x896xf32>
    %26 = arith.addf %20, %25 : vector<24x896xf32>
    %c0_10 = arith.constant 0 : index
    %c3 = arith.constant 3 : index
    %27 = vector.load %arg1[%c0_10, %c3] : memref<24x9xf32, #tpu.memory_space<vmem>>, vector<24x1xf32>
    %c3_11 = arith.constant 3 : index
    %c0_12 = arith.constant 0 : index
    %28 = vector.load %arg0[%c3_11, %c0_12] : memref<4x896xf32, #tpu.memory_space<vmem>>, vector<1x896xf32>
    %29 = vector.broadcast %27 : vector<24x1xf32> to vector<24x896xf32>
    %30 = vector.broadcast %28 : vector<1x896xf32> to vector<24x896xf32>
    %31 = arith.mulf %29, %30 : vector<24x896xf32>
    %32 = arith.addf %26, %31 : vector<24x896xf32>
    %cst = arith.constant dense<0.000000e+00> : vector<24xf32>
    %33 = vector.multi_reduction <add>, %32, %cst [1] : vector<24x896xf32> to vector<24xf32>
    %34 = vector.shape_cast %33 : vector<24xf32> to vector<24x1xf32>
    %35 = arith.mulf %32, %32 : vector<24x896xf32>
    %cst_13 = arith.constant dense<0.000000e+00> : vector<24xf32>
    %36 = vector.multi_reduction <add>, %35, %cst_13 [1] : vector<24x896xf32> to vector<24xf32>
    %37 = vector.shape_cast %36 : vector<24xf32> to vector<24x1xf32>
    %cst_14 = arith.constant 1.250000e-03 : f32
    %38 = vector.broadcast %cst_14 : f32 to vector<24x1xf32>
    %39 = arith.mulf %34, %38 : vector<24x1xf32>
    %cst_15 = arith.constant 1.250000e-03 : f32
    %40 = vector.broadcast %cst_15 : f32 to vector<24x1xf32>
    %41 = arith.mulf %37, %40 : vector<24x1xf32>
    %42 = arith.mulf %39, %39 : vector<24x1xf32>
    %43 = arith.subf %41, %42 : vector<24x1xf32>
    %cst_16 = arith.constant 9.99999974E-6 : f32
    %44 = vector.broadcast %cst_16 : f32 to vector<24x1xf32>
    %45 = arith.addf %43, %44 : vector<24x1xf32>
    %46 = math.rsqrt %45 : vector<24x1xf32>
    %c0_17 = arith.constant 0 : index
    %c5 = arith.constant 5 : index
    %47 = vector.load %arg1[%c0_17, %c5] : memref<24x9xf32, #tpu.memory_space<vmem>>, vector<24x1xf32>
    %48 = arith.mulf %46, %47 : vector<24x1xf32>
    %49 = vector.broadcast %39 : vector<24x1xf32> to vector<24x896xf32>
    %50 = arith.subf %32, %49 : vector<24x896xf32>
    %51 = vector.broadcast %48 : vector<24x1xf32> to vector<24x896xf32>
    %52 = arith.mulf %50, %51 : vector<24x896xf32>
    %c0_18 = arith.constant 0 : index
    %c6 = arith.constant 6 : index
    %53 = vector.load %arg1[%c0_18, %c6] : memref<24x9xf32, #tpu.memory_space<vmem>>, vector<24x1xf32>
    %54 = vector.broadcast %53 : vector<24x1xf32> to vector<24x896xf32>
    %55 = arith.addf %52, %54 : vector<24x896xf32>
    %cst_19 = arith.constant 3.000000e+00 : f32
    %56 = vector.broadcast %cst_19 : f32 to vector<24x896xf32>
    %57 = arith.subf %55, %56 : vector<24x896xf32>
    %cst_20 = arith.constant 6.000000e+00 : f32
    %58 = vector.broadcast %cst_20 : f32 to vector<24x896xf32>
    %59 = arith.minimumf %57, %58 : vector<24x896xf32>
    %60 = arith.mulf %55, %59 : vector<24x896xf32>
    %61 = vector.broadcast %4 : vector<1x896xf32> to vector<24x896xf32>
    %62 = arith.mulf %60, %61 : vector<24x896xf32>
    %cst_21 = arith.constant dense<0.000000e+00> : vector<24xf32>
    %63 = vector.multi_reduction <add>, %62, %cst_21 [1] : vector<24x896xf32> to vector<24xf32>
    %64 = vector.shape_cast %63 : vector<24xf32> to vector<24x1xf32>
    %65 = arith.mulf %62, %62 : vector<24x896xf32>
    %cst_22 = arith.constant dense<0.000000e+00> : vector<24xf32>
    %66 = vector.multi_reduction <add>, %65, %cst_22 [1] : vector<24x896xf32> to vector<24xf32>
    %67 = vector.shape_cast %66 : vector<24xf32> to vector<24x1xf32>
    %cst_23 = arith.constant 1.250000e-03 : f32
    %68 = vector.broadcast %cst_23 : f32 to vector<24x1xf32>
    %69 = arith.mulf %64, %68 : vector<24x1xf32>
    %cst_24 = arith.constant 1.250000e-03 : f32
    %70 = vector.broadcast %cst_24 : f32 to vector<24x1xf32>
    %71 = arith.mulf %67, %70 : vector<24x1xf32>
    %72 = arith.mulf %69, %69 : vector<24x1xf32>
    %73 = arith.subf %71, %72 : vector<24x1xf32>
    %cst_25 = arith.constant 9.99999974E-6 : f32
    %74 = vector.broadcast %cst_25 : f32 to vector<24x1xf32>
    %75 = arith.addf %73, %74 : vector<24x1xf32>
    %76 = math.rsqrt %75 : vector<24x1xf32>
    %c0_26 = arith.constant 0 : index
    %c7 = arith.constant 7 : index
    %77 = vector.load %arg1[%c0_26, %c7] : memref<24x9xf32, #tpu.memory_space<vmem>>, vector<24x1xf32>
    %78 = arith.mulf %76, %77 : vector<24x1xf32>
    %79 = vector.broadcast %69 : vector<24x1xf32> to vector<24x896xf32>
    %80 = arith.subf %62, %79 : vector<24x896xf32>
    %81 = vector.broadcast %78 : vector<24x1xf32> to vector<24x896xf32>
    %82 = arith.mulf %80, %81 : vector<24x896xf32>
    %c0_27 = arith.constant 0 : index
    %c8 = arith.constant 8 : index
    %83 = vector.load %arg1[%c0_27, %c8] : memref<24x9xf32, #tpu.memory_space<vmem>>, vector<24x1xf32>
    %84 = vector.broadcast %83 : vector<24x1xf32> to vector<24x896xf32>
    %85 = arith.addf %82, %84 : vector<24x896xf32>
    %86 = vector.extract_strided_slice %85 {offsets = [0, 0], sizes = [18, 896], strides = [1, 1]} : vector<24x896xf32> to vector<18x896xf32>
    %c0_28 = arith.constant 0 : index
    %c0_29 = arith.constant 0 : index
    %87 = vector.load %arg2[%c0_28, %c0_29] : memref<18x896xf32, #tpu.memory_space<vmem>>, vector<18x896xf32>
    tpu.vector_store %arg2[%c0_28, %c0_29], %86 {strides = array<i32>} : memref<18x896xf32, #tpu.memory_space<vmem>>, vector<18x896xf32>,
    return
  }
}

</mosaic_0001>

<bundles_post_ra>
// kernel: tile.6
= control target key start
LH: loop header
LB: loop body
LE: loop exit
PB: predicated region body
PF: predicated region fallthrough
CT: control target
= control target key end

     0   :  { %s58_s0 = inlined_call_operand.vmem [shape: f32[400], index: 0, kind: input, shape index: {}]   ;;  %s59_s1 = inlined_call_operand.vmem [shape: f32[2,400], index: 1, kind: output, shape index: {}]  }
   0x1   :  { %v4_v0 = vld [vmem:[%s58_s0] ss:$0 sm:$0xff]  ;;  %v18_v1 = vld [vmem:[%s58_s0 + $0x1] ss:$0 sm:$0xff]  ;;  %v20_v2 = vld [vmem:[%s58_s0 + $0x2] ss:$0 sm:$0xff] }
   0x2   :  { %5 = vst [vmem:[%s59_s1] sm:$0x3] %v4_v0  ;;  %19 = vst [vmem:[%s59_s1 + $0x2] sm:$0x3] %v18_v1  ;;  %v22_v3 = vld [vmem:[%s58_s0 + $0x3] ss:$0 sm:$0xff] }
   0x3   :  { %21 = vst [vmem:[%s59_s1 + $0x4] sm:$0x3] %v20_v2  ;;  %23 = vst [vmem:[%s59_s1 + $0x6] sm:$0x3] %v22_v3 }

// kernel: tile.5
= control target key start
LH: loop header
LB: loop body
LE: loop exit
PB: predicated region body
PF: predicated region fallthrough
CT: control target
= control target key end

     0   :  { %vm9_vm0 = vcmask 31744   ;;  %vm13_vm1 = vcmask 130048   ;;  %s202_s14 = smov 124   ;;  %vm23_vm2 = vcmask 64512   ;;  %s203_s19 = smov 112   ;;  %vm3_vm3 = vcmask 162816   ;;  %s307_s0 = inlined_call_operand.vmem [shape: f32[20,20], index: 0, kind: input, shape index: {}]   ;;  %s308_s1 = inlined_call_operand.vmem [shape: f32[400], index: 1, kind: output, shape index: {}]  }
   0x1   :  { %v161_v0 = vld [vmem:[%s307_s0 + $0x13] sm:$0x1]   ;;  %v165_v3 = vld [vmem:[%s307_s0 + $0xc] sm:$0x1]   ;;  %v163_v6 = vld [vmem:[%s307_s0 + $0x6] sm:$0x1]  }
   0x2   :  { %v162_v1 = vld [vmem:[%s307_s0 + $0x13] sm:$0x1]   ;;  %v166_v4 = vld [vmem:[%s307_s0 + $0xc] sm:$0x1]   ;;  %v164_v7 = vld [vmem:[%s307_s0 + $0x6] sm:$0x1]  }
   0x3   :  { %v10_v2 = vsel %vm9_vm0, %v162_v1, %v161_v0  ;;  %v37_v5 = vsel %vm13_vm1, %v166_v4, %v165_v3  ;;  %v24_v8 = vsel %vm23_vm2, %v164_v7, %v163_v6  ;;  %v167_v9 = vld [vmem:[%s307_s0 + $0x12] sm:$0x1]   ;;  %s204_s22 = smov 120   ;;  %s205_s23 = smov 104   ;;  %v168_v10 = vld [vmem:[%s307_s0 + $0x5] sm:$0x1]  }
   0x4   :  { %11 = vrot.lane.b32.xlu0 %v10_v2, %s202_s14  ;;  %38 = vrot.lane.b32.xlu1 %v37_v5, %s203_s19  ;;  %v169_v11 = vld [vmem:[%s307_s0 + $0xb] sm:$0x1]   ;;  %s206_s28 = smov 100   ;;  %s207_s29 = smov 92   ;;  %v170_v12 = vld [vmem:[%s307_s0 + $0x11] sm:$0x1]  }
   0x5   :  { %v2_v13 = vld [vmem:[%s307_s0] sm:$0x1]   ;;  %v171_v14 = vld [vmem:[%s307_s0 + $0x4] sm:$0x1]   ;;  %s208_s7 = smov 84   ;;  %s209_s8 = smov 80  }
   0x6   :  { %4 = vst.msk [vmem:[#allocation0] sm:$0x1] %vm3_vm3, %v2_v13   ;;  %v172_v15 = vld [vmem:[%s307_s0 + $0xa] sm:$0x1]   ;;  %v173_v16 = vld [vmem:[%s307_s0 + $0x10] sm:$0x1]  }
   0x7   :  { %s210_s13 = smov 72   ;;  %s211_s14 = smov 64   ;;  %v174_v17 = vld [vmem:[%s307_s0 + $0x3] sm:$0x1]   ;;  %v175_v18 = vld [vmem:[%s307_s0 + $0x9] sm:$0x1]  }
   0x8   :  { %25 = vrot.lane.b32.xlu0 %v24_v8, %s204_s22  ;;  %48 = vrot.lane.b32.xlu1 %v167_v9, %s205_s23  ;;  %s212_s19 = smov 60   ;;  %s213_s20 = smov 52   ;;  %v176_v19 = vld [vmem:[%s307_s0 + $0xf] sm:$0x1]   ;;  %v177_v20 = vld [vmem:[%s307_s0 + $0x2] sm:$0x1]  }
   0x9   :  { %s214_s25 = smov 44   ;;  %s215_s26 = smov 40   ;;  %v178_v21 = vld [vmem:[%s307_s0 + $0x8] sm:$0x1]   ;;  %v179_v22 = vld [vmem:[%s307_s0 + $0xe] sm:$0x1]  }
   0xa   :  { %s216_s2 = smov 32   ;;  %s217_s3 = smov 24   ;;  %v180_v23 = vld [vmem:[%s307_s0 + $0x1] sm:$0x1]   ;;  %v181_v24 = vld [vmem:[%s307_s0 + $0x7] sm:$0x1]  }
   0xb   :  { %s219_s9 = smov 12   ;;  %v182_v25 = vld [vmem:[%s307_s0 + $0xd] sm:$0x1]   ;;  %s220_s0 = smov 4   ;;  %vm16_vm4 = vcmask 1048544   ;;  %vm27_vm5 = vcmask 97280  }
   0xc   :  { %55 = vrot.lane.b32.xlu0 %v168_v10, %s206_s28  ;;  %61 = vrot.lane.b32.xlu1 %v169_v11, %s207_s29  ;;  %vm30_vm6 = vcmask 1048512   ;;  %vm43_vm7 = vcmask 1048448   ;;  %vm50_vm8 = vcmask 1015616   ;;  %vm57_vm9 = vcmask 982816  }
   0xd   :  { %vm63_vm10 = vcmask 917216   ;;  %vm70_vm11 = vcmask 851616   ;;  %vm77_vm12 = vcmask 818816   ;;  %vm83_vm13 = vcmask 753216  }
   0xe   :  { %vm90_vm14 = vcmask 687616   ;;  %vm97_vm15 = vcmask 654816   ;;  %vm117_vm2 = vcmask 490816   ;;  %vm123_vm3 = vcmask 425216  }
  0x10   :  { %68 = vrot.lane.b32.xlu0 %v170_v12, %s208_s7  ;;  %75 = vrot.lane.b32.xlu1 %v171_v14, %s209_s8  ;;  %s218_s8 = smov 20  }
  0x14   :  { %81 = vrot.lane.b32.xlu0 %v172_v15, %s210_s13  ;;  %88 = vrot.lane.b32.xlu1 %v173_v16, %s211_s14 }
  0x18   :  { %95 = vrot.lane.b32.xlu0 %v174_v17, %s212_s19  ;;  %101 = vrot.lane.b32.xlu1 %v175_v18, %s213_s20 }
  0x1c   :  { %108 = vrot.lane.b32.xlu0 %v176_v19, %s214_s25  ;;  %115 = vrot.lane.b32.xlu1 %v177_v20, %s215_s26 }
  0x20   :  { %121 = vrot.lane.b32.xlu0 %v178_v21, %s216_s2  ;;  %128 = vrot.lane.b32.xlu1 %v179_v22, %s217_s3 }
  0x24   :  { %135 = vrot.lane.b32.xlu0 %v180_v23, %s218_s8  ;;  %141 = vrot.lane.b32.xlu1 %v181_v24, %s219_s9 }
  0x28   :  { %148 = vrot.lane.b32.xlu0 %v182_v25, %s220_s0 }
  0x76   :  { %v12_v26 = vpop.permute.xlu0 %11   ;;  %v39_v27 = vpop.permute.xlu1 %38  }
  0x77   :  { %15 = vst.msk [vmem:[#allocation0 + $0x3] sm:$0x1] %vm13_vm1, %v12_v26   ;;  %vm110_vm1 = vcmask 523616  }
  0x78   :  { %18 = vst.msk [vmem:[#allocation0 + $0x2] sm:$0x1] %vm16_vm4, %v12_v26   ;;  %vm130_vm4 = vcmask 359616  }
  0x79   :  { %42 = vst.msk [vmem:[#allocation0 + $0x2] sm:$0x1] %vm9_vm0, %v39_v27   ;;  %vm103_vm0 = vcmask 589216  }
  0x7a   :  { %v26_v28 = vpop.permute.xlu0 %25   ;;  %v49_v29 = vpop.permute.xlu1 %48  }
  0x7b   :  { %29 = vst.msk [vmem:[#allocation0 + $0x1] sm:$0x1] %vm27_vm5, %v26_v28   ;;  %vm137_vm5 = vcmask 326816  }
  0x7c   :  { %31 = vst.msk [vmem:[#allocation0] sm:$0x1] %vm30_vm6, %v26_v28   ;;  %vm143_vm6 = vcmask 261216  }
  0x7d   :  { %45 = vst.msk [vmem:[#allocation0 + $0x1] sm:$0x1] %vm43_vm7, %v39_v27   ;;  %vm150_vm7 = vcmask 195616  }
  0x7e   :  { %52 = vst.msk [vmem:[#allocation0 + $0x2] sm:$0x1] %vm50_vm8, %v49_v29   ;;  %v56_v30 = vpop.permute.xlu0 %55   ;;  %v62_v31 = vpop.permute.xlu1 %61  }
  0x7f   :  { %58 = vst.msk [vmem:[#allocation0] sm:$0x1] %vm57_vm9, %v56_v30  }
  0x80   :  { %65 = vst.msk [vmem:[#allocation0 + $0x1] sm:$0x1] %vm63_vm10, %v62_v31  }
  0x82   :  { %v69_v32 = vpop.permute.xlu0 %68   ;;  %v76_v33 = vpop.permute.xlu1 %75  }
  0x83   :  { %72 = vst.msk [vmem:[#allocation0 + $0x2] sm:$0x1] %vm70_vm11, %v69_v32  }
  0x84   :  { %78 = vst.msk [vmem:[#allocation0] sm:$0x1] %vm77_vm12, %v76_v33  }
  0x86   :  { %v82_v34 = vpop.permute.xlu0 %81   ;;  %v89_v35 = vpop.permute.xlu1 %88  }
  0x87   :  { %85 = vst.msk [vmem:[#allocation0 + $0x1] sm:$0x1] %vm83_vm13, %v82_v34  }
  0x88   :  { %92 = vst.msk [vmem:[#allocation0 + $0x2] sm:$0x1] %vm90_vm14, %v89_v35  }
  0x8a   :  { %v96_v36 = vpop.permute.xlu0 %95   ;;  %v102_v37 = vpop.permute.xlu1 %101  }
  0x8b   :  { %98 = vst.msk [vmem:[#allocation0] sm:$0x1] %vm97_vm15, %v96_v36  }
  0x8c   :  { %105 = vst.msk [vmem:[#allocation0 + $0x1] sm:$0x1] %vm103_vm0, %v102_v37  }
  0x8e   :  { %v109_v38 = vpop.permute.xlu0 %108   ;;  %v116_v39 = vpop.permute.xlu1 %115  }
  0x8f   :  { %112 = vst.msk [vmem:[#allocation0 + $0x2] sm:$0x1] %vm110_vm1, %v109_v38  }
  0x90   :  { %118 = vst.msk [vmem:[#allocation0] sm:$0x1] %vm117_vm2, %v116_v39  }
  0x92   :  { %v122_v40 = vpop.permute.xlu0 %121   ;;  %v129_v41 = vpop.permute.xlu1 %128  }
  0x93   :  { %125 = vst.msk [vmem:[#allocation0 + $0x1] sm:$0x1] %vm123_vm3, %v122_v40  }
  0x94   :  { %132 = vst.msk [vmem:[#allocation0 + $0x2] sm:$0x1] %vm130_vm4, %v129_v41  }
  0x96   :  { %v136_v42 = vpop.permute.xlu0 %135   ;;  %v142_v43 = vpop.permute.xlu1 %141  }
  0x97   :  { %138 = vst.msk [vmem:[#allocation0] sm:$0x1] %vm137_vm5, %v136_v42  }
  0x98   :  { %145 = vst.msk [vmem:[#allocation0 + $0x1] sm:$0x1] %vm143_vm6, %v142_v43  }
  0x9a   :  { %v149_v44 = vpop.permute.xlu0 %148  }
  0x9b   :  { %152 = vst.msk [vmem:[#allocation0 + $0x2] sm:$0x1] %vm150_vm7, %v149_v44  }
  0xa2   :  { %v157_v45 = vld [vmem:[#allocation0] sm:$0xf] }
  0xa3   :  { %160 = vst [vmem:[%s308_s1] sm:$0xf] %v157_v45 }

// kernel: tile.7
= control target key start
LH: loop header
LB: loop body
LE: loop exit
PB: predicated region body
PF: predicated region fallthrough
CT: control target
= control target key end

     0   :  { %vm32_vm0 = vcmask 916480   ;;  %vm47_vm1 = vcmask 1042434   ;;  %vm23_vm2 = vcmask 130048   ;;  %s122_s14 = smov 16   ;;  %vm39_vm3 = vcmask 261248   ;;  %s168_s0 = inlined_call_operand.vmem [shape: f32[2,400], index: 0, kind: input, shape index: {}]   ;;  %s169_s1 = inlined_call_operand.vmem [shape: f32[1,800], index: 1, kind: output, shape index: {}]  }
   0x1   :  { %v112_v0 = vld [vmem:[%s168_s0 + $0x6] sm:$0x3]  ;;  %v113_v1 = vld [vmem:[%s168_s0 + $0x4] sm:$0x3]  ;;  %v114_v2 = vld [vmem:[%s168_s0 + $0x2] sm:$0x3] }
   0x2   :  { %9 = vst [vmem:[#allocation1 + $0x18] sm:$0x3] %v112_v0  ;;  %14 = vst [vmem:[#allocation1 + $0x10] sm:$0x3] %v113_v1  ;;  %v19_v3 = vld [vmem:[%s168_s0] sm:$0x3] }
   0x3   :  { %18 = vst [vmem:[#allocation1 + $0x8] sm:$0x3] %v114_v2  ;;  %20 = vst [vmem:[#allocation1] sm:$0x3] %v19_v3  ;;  %s43_s0 = smov 3  ;;  %vm51_vm4 = vcmask 1047680  }
   0x9   :  { %v31_v4 = vld [vmem:[#allocation1 + $0x19] sm:$0x1]   ;;  %v22_v6 = vld [vmem:[#allocation1 + $0x18] sm:$0x1]  }
   0xa   :  { %v44_v5 = vld [vmem:[#allocation1 + $0x9] ss:$8 sm:%s43_s0]   ;;  %v26_v7 = vld [vmem:[#allocation1] ss:$8 sm:$0x7]  }
   0xb   :  { %v29_v8 = vld [vmem:[#allocation1 + $0x1] ss:$8 sm:$0x7]   ;;  %25 = vst.msk [vmem:[#allocation0 + $0x18] sm:$0x1] %vm23_vm2, %v22_v6  }
   0xc   :  { %27 = vst [vmem:[#allocation0] ss:$8 sm:$0x7] %v26_v7   ;;  %v33_v9 = vsel %vm32_vm0, %v31_v4, %v29_v8  ;;  %v46_v10 = vld [vmem:[#allocation1 - $0x1] sm:$0x4]  }
   0xd   :  { %34 = vrot.lane.b32.xlu0 %v33_v9, %s122_s14  ;;  %v48_v11 = vsel %vm47_vm1, %v46_v10, %v44_v5 }
  0x11   :  { %49 = vrot.lane.b32.xlu0 %v48_v11, %s122_s14 }
  0x13   :  { %v60_v12 = vld [vmem:[#allocation0] sm:$0x1]  ;;  %v65_v13 = vld [vmem:[#allocation0 + $0x8] sm:$0x1]  ;;  %v71_v14 = vld [vmem:[#allocation0 + $0x10] sm:$0x1] }
  0x14   :  { %63 = vst [vmem:[%s169_s1] sm:$0x1] %v60_v12  ;;  %115 = vst [vmem:[%s169_s1 + $0x1] sm:$0x1] %v65_v13 }
  0x15   :  { %116 = vst [vmem:[%s169_s1 + $0x2] sm:$0x1] %v71_v14 }
  0x7f   :  { %v35_v15 = vpop.permute.xlu0 %34  }
  0x80   :  { %38 = vst.msk [vmem:[#allocation0 + $0x20] ss:$8 sm:$0x7] %vm23_vm2, %v35_v15  }
  0x81   :  { %41 = vst.msk [vmem:[#allocation0 + $0x30] sm:$0x1] %vm39_vm3, %v35_v15  }
  0x83   :  { %v50_v16 = vpop.permute.xlu0 %49  }
  0x84   :  { %53 = vst.msk [vmem:[#allocation0 + $0x20] ss:$8 sm:$0x3] %vm51_vm4, %v50_v16   ;;  %55 = vst.msk [vmem:[#allocation0 + $0x16] sm:$0x4] %vm51_vm4, %v50_v16  }
  0x88   :  { %v99_v17 = vld [vmem:[#allocation0 + $0x30] sm:$0x1] }
  0x89   :  { %120 = vst [vmem:[%s169_s1 + $0x6] sm:$0x1] %v99_v17 }
  0x8b   :  { %v78_v18 = vld [vmem:[#allocation0 + $0x18] sm:$0x1]  ;;  %v85_v19 = vld [vmem:[#allocation0 + $0x20] sm:$0x1]  ;;  %v92_v20 = vld [vmem:[#allocation0 + $0x28] sm:$0x1] }
  0x8c   :  { %117 = vst [vmem:[%s169_s1 + $0x3] sm:$0x1] %v78_v18  ;;  %118 = vst [vmem:[%s169_s1 + $0x4] sm:$0x1] %v85_v19 }
  0x8d   :  { %119 = vst [vmem:[%s169_s1 + $0x5] sm:$0x1] %v92_v20 }

// kernel: model_forward.1
= control target key start
LH: loop header
LB: loop body
LE: loop exit
PB: predicated region body
PF: predicated region fallthrough
CT: control target
= control target key end

     0   :  { %v984_v0 = vmov 0   ;;  %v985_v4 = vmov 4   ;;  %v986_v5 = vmov 1   ;;  %v987_v6 = vmov 2   ;;  %s1683_s1 = inlined_call_operand.vmem [shape: f32[24,9], index: 1, kind: input, shape index: {}]   ;;  %s1684_s0 = inlined_call_operand.vmem [shape: f32[4,896], index: 0, kind: input, shape index: {}]   ;;  %s1685_s2 = inlined_call_operand.vmem [shape: f32[18,896], index: 2, kind: output, shape index: {}]  }
   0x1   :  { %951 = vset.pattern.permute.xlu1 %v984_v0  ;;  %950 = vset.pattern.permute.xlu0 %v984_v0  ;;  %v1012_v1 = vld [vmem:[%s1683_s1 + $0x10] sm:$0xff]  ;;  %v1017_v2 = vld [vmem:[%s1683_s1] sm:$0xff]  ;;  %v1024_v3 = vld [vmem:[%s1683_s1 + $0x8] sm:$0xff]  ;;  %v988_v7 = vmov 3   ;;  %v11_v8 = vlaneseq  ;;  %v989_v35 = vmov 0.0  }
   0x2   :  { %1694 = vst [vmem:[#allocation2_spill] sm:$0xff] %v1012_v1  ;;  %1695 = vst [vmem:[#allocation3_spill] sm:$0xff] %v1017_v2  ;;  %89 = vperm.xlu1 %951, %v1012_v1   ;;  %81 = vperm.xlu0 %950, %v1017_v2   ;;  %v79_v18 = vld [vmem:[%s1684_s0] ss:$4 sm:$0xff]  ;;  %v916_v20 = vld [vmem:[%s1684_s0 + $0x1] ss:$4 sm:$0xff] }
   0x3   :  { %1696 = vst [vmem:[#allocation4_spill] sm:$0xff] %v1024_v3  ;;  %v12_v9 = vand.u32 127, %v11_v8  ;;  %v94_v10 = vshrl.u32 %v11_v8, 7  ;;  %v917_v29 = vld [vmem:[%s1684_s0 + $0x2] ss:$4 sm:$0xff] }
   0x4   :  { %v918_v34 = vld [vmem:[%s1684_s0 + $0x3] ss:$4 sm:$0xff] }
   0x5   :  { %v18_v11 = vadd.s32 768, %v12_v9  ;;  %v95_v12 = vsub.s32 0, %v94_v10  ;;  %v99_v13 = vsub.s32 1, %v94_v10  ;;  %v103_v14 = vsub.s32 2, %v94_v10 }
   0x6   :  { %952 = vset.pattern.permute.xlu1 %v985_v4  ;;  %85 = vperm.xlu0 %950, %v1024_v3   ;;  %v107_v15 = vsub.s32 3, %v94_v10  ;;  %v111_v16 = vsub.s32 4, %v94_v10  ;;  %v115_v17 = vsub.s32 5, %v94_v10  ;;  %v119_v19 = vsub.s32 6, %v94_v10 }
   0x7   :  { %45 = vperm.xlu1 %952, %v1017_v2   ;;  %vm25_vm0 = vcmp.lt.s32.totalorder %v18_v11, 800  ;;  %v96_v21 = vrot.slane %v79_v18, %v95_v12  ;;  %v100_v22 = vrot.slane %v79_v18, %v99_v13  ;;  %v104_v23 = vrot.slane %v79_v18, %v103_v14 }
   0x8   :  { %v108_v25 = vrot.slane %v79_v18, %v107_v15  ;;  %v112_v26 = vrot.slane %v79_v18, %v111_v16  ;;  %v116_v27 = vrot.slane %v79_v18, %v115_v17  ;;  %v120_v30 = vrot.slane %v79_v18, %v119_v19 }
   0x9   :  { %v1048_v31 = vrot.slane %v916_v20, %v95_v12  ;;  %v1050_v32 = vrot.slane %v916_v20, %v99_v13  ;;  %v1052_v33 = vrot.slane %v916_v20, %v103_v14  ;;  %v1058_v36 = vsel %vm25_vm0, 1.0, %v989_v35 }
   0xa   :  { %953 = vset.pattern.permute.xlu0 %v985_v4  ;;  %1697 = vst [vmem:[#allocation5_spill] sm:$0xff] %v1058_v36  ;;  %v1060_v37 = vrot.slane %v916_v20, %v107_v15  ;;  %v1062_v38 = vrot.slane %v916_v20, %v111_v16  ;;  %v1064_v39 = vrot.slane %v916_v20, %v115_v17 }
   0xb   :  { %55 = vperm.xlu1 %952, %v1012_v1   ;;  %50 = vperm.xlu0 %953, %v1024_v3   ;;  %v1066_v40 = vrot.slane %v916_v20, %v119_v19  ;;  %v1068_v41 = vrot.slane %v917_v29, %v95_v12  ;;  %v1070_v42 = vrot.slane %v917_v29, %v99_v13 }
   0xc   :  { %v1072_v43 = vrot.slane %v917_v29, %v103_v14  ;;  %v1074_v44 = vrot.slane %v917_v29, %v107_v15  ;;  %v1076_v46 = vrot.slane %v918_v34, %v95_v12  ;;  %v1078_v47 = vrot.slane %v918_v34, %v99_v13 }
   0xd   :  { %v1080_v48 = vrot.slane %v918_v34, %v103_v14  ;;  %v1082_v49 = vrot.slane %v917_v29, %v111_v16  ;;  %v1084_v51 = vrot.slane %v917_v29, %v115_v17  ;;  %v1086_v52 = vrot.slane %v917_v29, %v119_v19 }
   0xe   :  { %v1088_v53 = vrot.slane %v918_v34, %v107_v15  ;;  %v1090_v54 = vrot.slane %v918_v34, %v111_v16  ;;  %v1092_v57 = vrot.slane %v918_v34, %v115_v17  ;;  %v1094_v58 = vrot.slane %v918_v34, %v119_v19 }
   0xf   :  { %954 = vset.pattern.permute.xlu1 %v986_v5  ;;  %955 = vset.pattern.permute.xlu0 %v986_v5 }
  0x10   :  { %173 = vperm.xlu1 %954, %v1017_v2   ;;  %177 = vperm.xlu0 %955, %v1024_v3  }
  0x14   :  { %181 = vperm.xlu1 %954, %v1012_v1   ;;  %957 = vset.pattern.permute.xlu0 %v987_v6 }
  0x15   :  { %269 = vperm.xlu0 %957, %v1024_v3  }
  0x18   :  { %956 = vset.pattern.permute.xlu1 %v987_v6 }
  0x19   :  { %265 = vperm.xlu1 %956, %v1017_v2   ;;  %959 = vset.pattern.permute.xlu0 %v988_v7 }
  0x1a   :  { %361 = vperm.xlu0 %959, %v1024_v3  }
  0x1d   :  { %273 = vperm.xlu1 %956, %v1012_v1  }
  0x21   :  { %958 = vset.pattern.permute.xlu1 %v988_v7 }
  0x22   :  { %357 = vperm.xlu1 %958, %v1017_v2  }
  0x26   :  { %365 = vperm.xlu1 %958, %v1012_v1  }
  0x7d   :  { %v90_v24 = vpop.permute.xlu1 %89  ;;  %v82_v28 = vpop.permute.xlu0 %81 }
  0x7e   :  { %v142_v55 = vmul.f32 %v96_v21, %v90_v24  ;;  %v143_v56 = vmul.f32 %v100_v22, %v90_v24  ;;  %v128_v59 = vmul.f32 %v96_v21, %v82_v28  ;;  %v129_v60 = vmul.f32 %v100_v22, %v82_v28 }
  0x7f   :  { %v130_v61 = vmul.f32 %v104_v23, %v82_v28  ;;  %v131_v62 = vmul.f32 %v108_v25, %v82_v28  ;;  %v144_v63 = vmul.f32 %v104_v23, %v90_v24  ;;  %v145_v0 = vmul.f32 %v108_v25, %v90_v24 }
  0x80   :  { %v146_v4 = vmul.f32 %v112_v26, %v90_v24  ;;  %v132_v5 = vmul.f32 %v112_v26, %v82_v28  ;;  %v147_v6 = vmul.f32 %v116_v27, %v90_v24  ;;  %v133_v7 = vmul.f32 %v116_v27, %v82_v28 }
  0x81   :  { %v86_v45 = vpop.permute.xlu0 %85  ;;  %v134_v10 = vmul.f32 %v120_v30, %v82_v28  ;;  %v1096_v11 = vmul.f32 %v120_v30, %v90_v24 }
  0x82   :  { %v46_v50 = vpop.permute.xlu1 %45  ;;  %v135_v12 = vmul.f32 %v96_v21, %v86_v45  ;;  %v136_v13 = vmul.f32 %v100_v22, %v86_v45  ;;  %v137_v14 = vmul.f32 %v104_v23, %v86_v45  ;;  %v138_v15 = vmul.f32 %v108_v25, %v86_v45 }
  0x83   :  { %1698 = vst [vmem:[#allocation6_spill] sm:$0xff] %v1096_v11  ;;  %v149_v16 = vadd.f32 %v128_v59, %v46_v50  ;;  %v150_v17 = vadd.f32 %v129_v60, %v46_v50  ;;  %v151_v18 = vadd.f32 %v130_v61, %v46_v50  ;;  %v1098_v19 = vadd.f32 %v131_v62, %v46_v50 }
  0x84   :  { %v1100_v20 = vadd.f32 %v132_v5, %v46_v50  ;;  %v139_v29 = vmul.f32 %v112_v26, %v86_v45  ;;  %v140_v34 = vmul.f32 %v116_v27, %v86_v45  ;;  %v141_v35 = vmul.f32 %v120_v30, %v86_v45 }
  0x85   :  { %v64_v28 = vmul.f32 %v1058_v36, %v46_v50  ;;  %v1103_v24 = vadd.f32 %v133_v7, %v46_v50 }
  0x86   :  { %v56_v8 = vpop.permute.xlu1 %55  ;;  %v51_v9 = vpop.permute.xlu0 %50 }
  0x87   :  { %v163_v1 = vadd.f32 %v142_v55, %v56_v8  ;;  %v164_v3 = vadd.f32 %v143_v56, %v56_v8  ;;  %v165_v21 = vadd.f32 %v144_v63, %v56_v8  ;;  %v1105_v22 = vadd.f32 %v145_v0, %v56_v8 }
  0x88   :  { %v1107_v23 = vadd.f32 %v146_v4, %v56_v8  ;;  %v71_v60 = vmul.f32 %v1058_v36, %v51_v9  ;;  %v156_v61 = vadd.f32 %v135_v12, %v51_v9  ;;  %v157_v26 = vadd.f32 %v136_v13, %v51_v9 }
  0x89   :  { %1699 = vst [vmem:[#allocation7_spill] sm:$0xff] %v1105_v22  ;;  %v158_v27 = vadd.f32 %v137_v14, %v51_v9  ;;  %v159_v30 = vadd.f32 %v138_v15, %v51_v9  ;;  %v160_v45 = vadd.f32 %v139_v29, %v51_v9  ;;  %v161_v62 = vadd.f32 %v140_v34, %v51_v9 }
  0x8a   :  { %1700 = vst [vmem:[#allocation8_spill] sm:$0xff] %v1107_v23  ;;  %v1118_v63 = vadd.f32 %v134_v10, %v64_v28  ;;  %v1121_v0 = vmul.f32 %v1058_v36, %v56_v8  ;;  %v1123_v4 = vadd.f32 %v147_v6, %v56_v8  ;;  %v162_v14 = vadd.f32 %v141_v35, %v71_v60 }
  0x8b   :  { %v1109_v25 = vpop.permute.xlu1 %173  ;;  %v178_v59 = vpop.permute.xlu0 %177 }
  0x8c   :  { %v220_v55 = vmul.f32 %v1048_v31, %v1109_v25  ;;  %v221_v50 = vmul.f32 %v1050_v32, %v1109_v25  ;;  %v222_v56 = vmul.f32 %v1052_v33, %v1109_v25  ;;  %1701 = vst [vmem:[#allocation9_spill] sm:$0xff] %v1121_v0  ;;  %1702 = vst [vmem:[#allocation10_spill] sm:$0xff] %v1123_v4 }
  0x8d   :  { %v227_v5 = vmul.f32 %v1048_v31, %v178_v59  ;;  %v228_v7 = vmul.f32 %v1050_v32, %v178_v59  ;;  %v229_v12 = vmul.f32 %v1052_v33, %v178_v59  ;;  %v1132_v15 = vmul.f32 %v1060_v37, %v1109_v25 }
  0x8e   :  { %v1136_v9 = vmul.f32 %v1062_v38, %v1109_v25  ;;  %v241_v29 = vadd.f32 %v220_v55, %v149_v16  ;;  %v242_v34 = vadd.f32 %v221_v50, %v150_v17  ;;  %v1142_v28 = vadd.f32 %v222_v56, %v151_v18 }
  0x8f   :  { %v1128_v13 = vpop.permute.xlu1 %181  ;;  %v230_v60 = vmul.f32 %v1060_v37, %v178_v59  ;;  %v231_v36 = vmul.f32 %v1062_v38, %v178_v59  ;;  %v249_v23 = vadd.f32 %v228_v7, %v157_v26  ;;  %v250_v22 = vadd.f32 %v229_v12, %v158_v27 }
  0x90   :  { %v234_v6 = vmul.f32 %v1048_v31, %v1128_v13  ;;  %v235_v8 = vmul.f32 %v1050_v32, %v1128_v13  ;;  %v270_v10 = vpop.permute.xlu0 %269  ;;  %v236_v35 = vmul.f32 %v1052_v33, %v1128_v13  ;;  %v248_v31 = vadd.f32 %v227_v5, %v156_v61 }
  0x91   :  { %v319_v2 = vmul.f32 %v1068_v41, %v270_v10  ;;  %v320_v4 = vmul.f32 %v1070_v42, %v270_v10  ;;  %v1152_v32 = vmul.f32 %v1060_v37, %v1128_v13  ;;  %v1156_v16 = vmul.f32 %v1062_v38, %v1128_v13 }
  0x92   :  { %v255_v33 = vadd.f32 %v234_v6, %v163_v1  ;;  %v256_v17 = vadd.f32 %v235_v8, %v164_v3  ;;  %v321_v18 = vmul.f32 %v1072_v43, %v270_v10  ;;  %v1161_v50 = vadd.f32 %v236_v35, %v165_v21 }
  0x93   :  { %1703 = vst [vmem:[#allocation11_spill] sm:$0xff] %v1152_v32  ;;  %1704 = vst [vmem:[#allocation12_spill] sm:$0xff] %v1156_v16  ;;  %v232_v27 = vmul.f32 %v1064_v39, %v178_v59  ;;  %v322_v38 = vmul.f32 %v1074_v44, %v270_v10  ;;  %v340_v56 = vadd.f32 %v319_v2, %v248_v31 }
  0x94   :  { %v1159_v55 = vpop.permute.xlu1 %265  ;;  %1705 = vst [vmem:[#allocation13_spill] sm:$0xff] %v1161_v50  ;;  %v341_v1 = vadd.f32 %v320_v4, %v249_v23  ;;  %v233_v3 = vmul.f32 %v1066_v40, %v178_v59  ;;  %v251_v7 = vadd.f32 %v230_v60, %v159_v30  ;;  %v252_v21 = vadd.f32 %v231_v36, %v160_v45 }
  0x95   :  { %v312_v61 = vmul.f32 %v1068_v41, %v1159_v55  ;;  %v313_v26 = vmul.f32 %v1070_v42, %v1159_v55  ;;  %v362_v37 = vpop.permute.xlu0 %361  ;;  %v323_v12 = vmul.f32 %v1082_v49, %v270_v10  ;;  %v314_v6 = vmul.f32 %v1072_v43, %v1159_v55 }
  0x96   :  { %v411_v5 = vmul.f32 %v1076_v46, %v362_v37  ;;  %v315_v8 = vmul.f32 %v1074_v44, %v1159_v55  ;;  %v412_v35 = vmul.f32 %v1078_v47, %v362_v37  ;;  %v324_v2 = vmul.f32 %v1084_v51, %v270_v10 }
  0x97   :  { %v333_v23 = vadd.f32 %v312_v61, %v241_v29  ;;  %v334_v59 = vadd.f32 %v313_v26, %v242_v34  ;;  %v413_v4 = vmul.f32 %v1080_v48, %v362_v37  ;;  %v253_v30 = vadd.f32 %v232_v27, %v161_v62 }
  0x98   :  { %v1177_v50 = vpop.permute.xlu1 %273  ;;  %v254_v36 = vadd.f32 %v233_v3, %v162_v14  ;;  %v325_v45 = vmul.f32 %v1086_v52, %v270_v10  ;;  %v342_v60 = vadd.f32 %v321_v18, %v250_v22  ;;  %v343_v31 = vadd.f32 %v322_v38, %v251_v7 }
  0x99   :  { %v326_v16 = vmul.f32 %v1068_v41, %v1177_v50  ;;  %v327_v32 = vmul.f32 %v1070_v42, %v1177_v50  ;;  %v414_v11 = vmul.f32 %v1088_v53, %v362_v37  ;;  %v1187_v0 = vadd.f32 %v411_v5, %v340_v56 }
  0x9a   :  { %v344_v29 = vadd.f32 %v323_v12, %v252_v21  ;;  %v345_v34 = vadd.f32 %v324_v2, %v253_v30  ;;  %v415_v61 = vmul.f32 %v1090_v54, %v362_v37  ;;  %v1190_v62 = vadd.f32 %v412_v35, %v341_v1 }
  0x9b   :  { %v328_v22 = vmul.f32 %v1072_v43, %v1177_v50  ;;  %v1196_v14 = vmul.f32 %v1074_v44, %v1177_v50  ;;  %v416_v42 = vmul.f32 %v1092_v57, %v362_v37  ;;  %v417_v10 = vmul.f32 %v1094_v58, %v362_v37 }
  0x9c   :  { %v1200_v18 = vadd.f32 %v413_v4, %v342_v60  ;;  %v454_v26 = vadd.f32 %v1190_v62, %v1187_v0  ;;  %v225_v27 = vmul.f32 %v1064_v39, %v1109_v25  ;;  %v226_v43 = vmul.f32 %v1066_v40, %v1109_v25 }
  0x9d   :  { %v358_v41 = vpop.permute.xlu1 %357  ;;  %v347_v38 = vadd.f32 %v326_v16, %v255_v33  ;;  %v348_v56 = vadd.f32 %v327_v32, %v256_v17  ;;  %v346_v44 = vadd.f32 %v325_v45, %v254_v36  ;;  %v1208_v1 = vadd.f32 %v414_v11, %v343_v31 }
  0x9e   :  { %v404_v3 = vmul.f32 %v1076_v46, %v358_v41  ;;  %v405_v37 = vmul.f32 %v1078_v47, %v358_v41  ;;  %v1212_v5 = vadd.f32 %v415_v61, %v344_v29  ;;  %v455_v7 = vadd.f32 %v454_v26, %v1200_v18 }
  0x9f   :  { %v406_v21 = vmul.f32 %v1080_v48, %v358_v41  ;;  %v1216_v12 = vadd.f32 %v416_v42, %v345_v34  ;;  %v1218_v35 = vadd.f32 %v417_v10, %v346_v44  ;;  %v244_v25 = vadd.f32 %v1132_v15, %v1098_v19  ;;  %v1707_v44 = vld [vmem:[#allocation6_spill] sm:$0xff] }
  0xa0   :  { %v456_v11 = vadd.f32 %v455_v7, %v1208_v1  ;;  %v245_v16 = vadd.f32 %v1136_v9, %v1100_v20  ;;  %v246_v33 = vadd.f32 %v225_v27, %v1103_v24  ;;  %v247_v17 = vadd.f32 %v226_v43, %v1118_v63  ;;  %v1706_v43 = vld [vmem:[#allocation9_spill] sm:$0xff]  ;;  %v1709_v7 = vld [vmem:[#allocation11_spill] sm:$0xff] }
  0xa1   :  { %v1222_v32 = vpop.permute.xlu1 %365  ;;  %v316_v2 = vmul.f32 %v1082_v49, %v1159_v55  ;;  %v317_v4 = vmul.f32 %v1084_v51, %v1159_v55  ;;  %v318_v19 = vmul.f32 %v1086_v52, %v1159_v55  ;;  %v335_v15 = vadd.f32 %v314_v6, %v1142_v28 }
  0xa2   :  { %v457_v30 = vadd.f32 %v456_v11, %v1212_v5  ;;  %v407_v36 = vmul.f32 %v1088_v53, %v358_v41  ;;  %v1238_v20 = vadd.f32 %v404_v3, %v333_v23  ;;  %v1240_v24 = vadd.f32 %v405_v37, %v334_v59  ;;  %v1708_v37 = vld [vmem:[#allocation7_spill] sm:$0xff]  ;;  %v1711_v11 = vld [vmem:[#allocation12_spill] sm:$0xff] }
  0xa3   :  { %v418_v63 = vmul.f32 %v1076_v46, %v1222_v32  ;;  %v336_v9 = vadd.f32 %v315_v8, %v244_v25  ;;  %v408_v45 = vmul.f32 %v1090_v54, %v358_v41  ;;  %v409_v60 = vmul.f32 %v1092_v57, %v358_v41  ;;  %v1710_v25 = vld [vmem:[#allocation8_spill] sm:$0xff] }
  0xa4   :  { %v458_v55 = vadd.f32 %v457_v30, %v1216_v12  ;;  %v410_v28 = vmul.f32 %v1094_v58, %v358_v41  ;;  %v1248_v6 = vadd.f32 %v406_v21, %v335_v15  ;;  %v446_v23 = vadd.f32 %v1240_v24, %v1238_v20  ;;  %v1713_v15 = vld [vmem:[#allocation10_spill] sm:$0xff] }
  0xa5   :  { %v419_v59 = vmul.f32 %v1078_v47, %v1222_v32  ;;  %v420_v46 = vmul.f32 %v1080_v48, %v1222_v32  ;;  %v337_v8 = vadd.f32 %v316_v2, %v245_v16  ;;  %v338_v31 = vadd.f32 %v317_v4, %v246_v33 }
  0xa6   :  { %v459_v29 = vadd.f32 %v458_v55, %v1218_v35  ;;  %v339_v34 = vadd.f32 %v318_v19, %v247_v17  ;;  %v1257_v61 = vadd.f32 %v407_v36, %v336_v9  ;;  %v447_v41 = vadd.f32 %v446_v23, %v1248_v6 }
  0xa7   :  { %v1260_v42 = vadd.f32 %v408_v45, %v337_v8  ;;  %v1262_v10 = vadd.f32 %v409_v60, %v338_v31  ;;  %v239_v26 = vmul.f32 %v1064_v39, %v1128_v13  ;;  %v240_v47 = vmul.f32 %v1066_v40, %v1128_v13  ;;  %v1712_v13 = vld [vmem:[#allocation13_spill] sm:$0xff] }
  0xa8   :  { %460 = vadd.xlane.f32.xlu0 %v459_v29  ;;  %v1268_v48 = vadd.f32 %v410_v28, %v339_v34  ;;  %v448_v27 = vadd.f32 %v447_v41, %v1257_v61  ;;  %v169_v3 = vadd.f32 %v1707_v44, %v1706_v43  ;;  %v258_v21 = vadd.f32 %v1709_v7, %v1708_v37 }
  0xa9   :  { %v259_v16 = vadd.f32 %v1711_v11, %v1710_v25  ;;  %v330_v39 = vmul.f32 %v1082_v49, %v1177_v50  ;;  %v331_v40 = vmul.f32 %v1084_v51, %v1177_v50  ;;  %v349_v33 = vadd.f32 %v328_v22, %v1712_v13 }
  0xaa   :  { %v449_v17 = vadd.f32 %v448_v27, %v1260_v42  ;;  %v421_v2 = vmul.f32 %v1088_v53, %v1222_v32  ;;  %v1285_v4 = vadd.f32 %v418_v63, %v347_v38  ;;  %v1287_v19 = vadd.f32 %v419_v59, %v348_v56 }
  0xab   :  { %v260_v30 = vadd.f32 %v239_v26, %v1713_v15  ;;  %v261_v36 = vadd.f32 %v240_v47, %v169_v3  ;;  %v350_v9 = vadd.f32 %v1196_v14, %v258_v21  ;;  %v422_v49 = vmul.f32 %v1090_v54, %v1222_v32 }
  0xac   :  { %v450_v51 = vadd.f32 %v449_v17, %v1262_v10  ;;  %v1294_v22 = vadd.f32 %v420_v46, %v349_v33  ;;  %v462_v45 = vadd.f32 %v1287_v19, %v1285_v4  ;;  %v470_v53 = vmul.f32 %v1238_v20, %v1238_v20 }
  0xad   :  { %v332_v38 = vmul.f32 %v1086_v52, %v1177_v50  ;;  %v351_v56 = vadd.f32 %v330_v39, %v259_v16  ;;  %v352_v63 = vadd.f32 %v331_v40, %v260_v30  ;;  %v471_v14 = vmul.f32 %v1240_v24, %v1240_v24 }
  0xae   :  { %v451_v54 = vadd.f32 %v450_v51, %v1268_v48  ;;  %v423_v60 = vmul.f32 %v1092_v57, %v1222_v32  ;;  %v1307_v55 = vadd.f32 %v421_v2, %v350_v9  ;;  %v463_v28 = vadd.f32 %v462_v45, %v1294_v22 }
  0xaf   :  { %v472_v23 = vmul.f32 %v1248_v6, %v1248_v6  ;;  %v491_v59 = vadd.f32 %v471_v14, %v470_v53  ;;  %v477_v52 = vmul.f32 %v1187_v0, %v1187_v0  ;;  %v478_v50 = vmul.f32 %v1190_v62, %v1190_v62 }
  0xb0   :  { %452 = vadd.xlane.f32.xlu1 %v451_v54  ;;  %v424_v46 = vmul.f32 %v1094_v58, %v1222_v32  ;;  %v1318_v8 = vadd.f32 %v422_v49, %v351_v56  ;;  %v464_v57 = vadd.f32 %v463_v28, %v1307_v55  ;;  %v473_v31 = vmul.f32 %v1257_v61, %v1257_v61 }
  0xb1   :  { %v492_v29 = vadd.f32 %v491_v59, %v472_v23  ;;  %v479_v34 = vmul.f32 %v1200_v18, %v1200_v18  ;;  %v499_v41 = vadd.f32 %v478_v50, %v477_v52  ;;  %v484_v26 = vmul.f32 %v1285_v4, %v1285_v4  ;;  %v1714_v52 = vld [vmem:[#allocation3_spill] sm:$0xff]  ;;  %v1715_v50 = vld [vmem:[#allocation4_spill] sm:$0xff] }
  0xb2   :  { %v353_v47 = vadd.f32 %v332_v38, %v261_v36  ;;  %v1327_v27 = vadd.f32 %v423_v60, %v352_v63  ;;  %v465_v58 = vadd.f32 %v464_v57, %v1318_v8  ;;  %v485_v32 = vmul.f32 %v1287_v19, %v1287_v19 }
  0xb3   :  { %v474_v43 = vmul.f32 %v1260_v42, %v1260_v42  ;;  %v493_v44 = vadd.f32 %v492_v29, %v473_v31  ;;  %v480_v3 = vmul.f32 %v1208_v1, %v1208_v1  ;;  %v500_v37 = vadd.f32 %v499_v41, %v479_v34 }
  0xb4   :  { %v1336_v7 = vadd.f32 %v424_v46, %v353_v47  ;;  %v466_v21 = vadd.f32 %v465_v58, %v1327_v27  ;;  %v486_v25 = vmul.f32 %v1294_v22, %v1294_v22  ;;  %v507_v11 = vadd.f32 %v485_v32, %v484_v26 }
  0xb5   :  { %v475_v16 = vmul.f32 %v1262_v10, %v1262_v10  ;;  %v494_v39 = vadd.f32 %v493_v44, %v474_v43  ;;  %v481_v40 = vmul.f32 %v1212_v5, %v1212_v5  ;;  %v501_v13 = vadd.f32 %v500_v37, %v480_v3 }
  0xb6   :  { %v467_v33 = vadd.f32 %v466_v21, %v1336_v7  ;;  %v487_v17 = vmul.f32 %v1307_v55, %v1307_v55  ;;  %v508_v2 = vadd.f32 %v507_v11, %v486_v25  ;;  %v476_v15 = vmul.f32 %v1268_v48, %v1268_v48 }
  0xb7   :  { %v495_v30 = vadd.f32 %v494_v39, %v475_v16  ;;  %v482_v36 = vmul.f32 %v1216_v12, %v1216_v12  ;;  %v502_v9 = vadd.f32 %v501_v13, %v481_v40  ;;  %v488_v49 = vmul.f32 %v1318_v8, %v1318_v8 }
  0xb8   :  { %468 = vadd.xlane.f32.xlu0 %v467_v33  ;;  %v509_v51 = vadd.f32 %v508_v2, %v487_v17  ;;  %v483_v53 = vmul.f32 %v1218_v35, %v1218_v35  ;;  %v489_v56 = vmul.f32 %v1327_v27, %v1327_v27  ;;  %v490_v54 = vmul.f32 %v1336_v7, %v1336_v7 }
  0xb9   :  { %v496_v45 = vadd.f32 %v495_v30, %v476_v15  ;;  %v503_v38 = vadd.f32 %v502_v9, %v482_v36  ;;  %v990_v23 = vmov 6   ;;  %v991_v59 = vmov 5   ;;  %v1716_v36 = vld [vmem:[#allocation2_spill] sm:$0xff] }
  0xba   :  { %v510_v63 = vadd.f32 %v509_v51, %v488_v49  ;;  %961 = vset.pattern.permute.xlu1 %v990_v23  ;;  %960 = vset.pattern.permute.xlu0 %v991_v59 }
  0xbb   :  { %497 = vadd.xlane.f32.xlu1 %v496_v45  ;;  %v504_v14 = vadd.f32 %v503_v38, %v483_v53 }
  0xbc   :  { %v511_v60 = vadd.f32 %v510_v63, %v489_v56 }
  0xbd   :  { %505 = vadd.xlane.f32.xlu0 %v504_v14 }
  0xbe   :  { %v512_v28 = vadd.f32 %v511_v60, %v490_v54 }
  0xc0   :  { %513 = vadd.xlane.f32.xlu1 %v512_v28 }
  0xd1   :  { %594 = vperm.xlu1 %961, %v1714_v52  }
  0xd5   :  { %598 = vperm.xlu1 %961, %v1715_v50  }
  0xd9   :  { %962 = vset.pattern.permute.xlu1 %v991_v59 }
 0x131   :  { %v461_v46 = vpop.xlane.xlu0 %460 }
 0x132   :  { %v1362_v34 = vmul.f32 0.00125, %v461_v46 }
 0x134   :  { %v522_v44 = vmul.f32 %v1362_v34, %v1362_v34  ;;  %v543_v51 = vsub.f32 %v1187_v0, %v1362_v34  ;;  %v544_v45 = vsub.f32 %v1190_v62, %v1362_v34  ;;  %v545_v53 = vsub.f32 %v1200_v18, %v1362_v34 }
 0x135   :  { %v546_v38 = vsub.f32 %v1208_v1, %v1362_v34  ;;  %v547_v56 = vsub.f32 %v1212_v5, %v1362_v34  ;;  %v548_v0 = vsub.f32 %v1216_v12, %v1362_v34  ;;  %v549_v62 = vsub.f32 %v1218_v35, %v1362_v34 }
 0x139   :  { %v453_v57 = vpop.xlane.xlu1 %452 }
 0x13a   :  { %v515_v31 = vmul.f32 0.00125, %v453_v57 }
 0x13c   :  { %v521_v26 = vmul.f32 %v515_v31, %v515_v31  ;;  %v536_v14 = vsub.f32 %v1238_v20, %v515_v31  ;;  %v537_v54 = vsub.f32 %v1240_v24, %v515_v31  ;;  %v538_v18 = vsub.f32 %v1248_v6, %v515_v31 }
 0x13d   :  { %v539_v60 = vsub.f32 %v1257_v61, %v515_v31  ;;  %v540_v1 = vsub.f32 %v1260_v42, %v515_v31  ;;  %v541_v5 = vsub.f32 %v1262_v10, %v515_v31 }
 0x141   :  { %v469_v29 = vpop.xlane.xlu0 %468 }
 0x142   :  { %v1364_v58 = vmul.f32 0.00125, %v469_v29 }
 0x144   :  { %v498_v41 = vpop.xlane.xlu1 %497  ;;  %v523_v11 = vmul.f32 %v1364_v58, %v1364_v58  ;;  %v550_v20 = vsub.f32 %v1285_v4, %v1364_v58  ;;  %v551_v24 = vsub.f32 %v1287_v19, %v1364_v58  ;;  %v552_v12 = vsub.f32 %v1294_v22, %v1364_v58 }
 0x145   :  { %v518_v47 = vmul.f32 0.00125, %v498_v41  ;;  %v553_v42 = vsub.f32 %v1307_v55, %v1364_v58  ;;  %v555_v22 = vsub.f32 %v1327_v27, %v1364_v58  ;;  %v556_v55 = vsub.f32 %v1336_v7, %v1364_v58 }
 0x146   :  { %v506_v32 = vpop.xlane.xlu0 %505 }
 0x147   :  { %v524_v43 = vsub.f32 %v518_v47, %v521_v26  ;;  %v519_v3 = vmul.f32 0.00125, %v506_v32 }
 0x149   :  { %v527_v37 = vadd.f32 1e-05, %v524_v43  ;;  %v525_v21 = vsub.f32 %v519_v3, %v522_v44  ;;  %v514_v25 = vpop.xlane.xlu1 %513 }
 0x14a   :  { %v520_v16 = vmul.f32 0.00125, %v514_v25 }
 0x14b   :  { %969 = vrsqrt.f32 %v527_v37  ;;  %v528_v39 = vadd.f32 1e-05, %v525_v21 }
 0x14c   :  { %v526_v40 = vsub.f32 %v520_v16, %v523_v11 }
 0x14d   :  { %971 = vrsqrt.f32 %v528_v39  ;;  %v595_v49 = vpop.permute.xlu1 %594 }
 0x14e   :  { %v529_v13 = vadd.f32 1e-05, %v526_v40 }
 0x150   :  { %973 = vrsqrt.f32 %v529_v13 }
 0x151   :  { %v1384_v63 = vpop.permute.xlu1 %598 }
 0x158   :  { %v970_v33 = vpop.eup %969 }
 0x159   :  { %v533_v17 = vmul.f32 %v970_v33, %v1714_v52 }
 0x15a   :  { %v972_v2 = vpop.eup %971 }
 0x15b   :  { %559 = vperm.xlu0 %960, %v533_v17   ;;  %v534_v15 = vmul.f32 %v972_v2, %v1715_v50 }
 0x15d   :  { %v974_v30 = vpop.eup %973  ;;  %564 = vperm.xlu1 %962, %v534_v15  }
 0x15e   :  { %v535_v9 = vmul.f32 %v974_v30, %v1716_v36 }
 0x161   :  { %569 = vperm.xlu1 %962, %v535_v9  }
 0x165   :  { %963 = vset.pattern.permute.xlu1 %v990_v23  ;;  %v542_v23 = vsub.f32 %v1268_v48, %v515_v31  ;;  %v554_v48 = vsub.f32 %v1318_v8, %v1364_v58 }
 0x166   :  { %602 = vperm.xlu1 %963, %v1716_v36  }
 0x1d6   :  { %v560_v28 = vpop.permute.xlu0 %559 }
 0x1d7   :  { %v572_v59 = vmul.f32 %v560_v28, %v536_v14  ;;  %v573_v6 = vmul.f32 %v560_v28, %v537_v54  ;;  %v574_v52 = vmul.f32 %v560_v28, %v538_v18  ;;  %v575_v61 = vmul.f32 %v560_v28, %v539_v60 }
 0x1d8   :  { %v565_v50 = vpop.permute.xlu1 %564  ;;  %v576_v10 = vmul.f32 %v560_v28, %v540_v1  ;;  %v577_v46 = vmul.f32 %v560_v28, %v541_v5  ;;  %v578_v57 = vmul.f32 %v560_v28, %v542_v23 }
 0x1d9   :  { %v605_v4 = vadd.f32 %v595_v49, %v572_v59  ;;  %v606_v29 = vadd.f32 %v595_v49, %v573_v6  ;;  %v579_v41 = vmul.f32 %v565_v50, %v543_v51  ;;  %v580_v19 = vmul.f32 %v565_v50, %v544_v45 }
 0x1da   :  { %v607_v26 = vadd.f32 %v595_v49, %v574_v52  ;;  %v608_v47 = vadd.f32 %v595_v49, %v575_v61  ;;  %v581_v31 = vmul.f32 %v565_v50, %v545_v53  ;;  %v609_v32 = vadd.f32 %v595_v49, %v576_v10 }
 0x1db   :  { %v610_v43 = vadd.f32 %v595_v49, %v577_v46  ;;  %v611_v3 = vadd.f32 %v595_v49, %v578_v57  ;;  %v919_v37 = vadd.f32 -3.0, %v605_v4  ;;  %v920_v21 = vadd.f32 -3.0, %v606_v29 }
 0x1dc   :  { %v1411_v44 = vpop.permute.xlu1 %569  ;;  %v921_v25 = vadd.f32 -3.0, %v607_v26  ;;  %v582_v11 = vmul.f32 %v565_v50, %v546_v38  ;;  %v612_v16 = vadd.f32 %v1384_v63, %v579_v41  ;;  %v613_v39 = vadd.f32 %v1384_v63, %v580_v19 }
 0x1dd   :  { %v586_v40 = vmul.f32 %v1411_v44, %v550_v20  ;;  %v922_v13 = vadd.f32 -3.0, %v608_v47  ;;  %v923_v33 = vadd.f32 -3.0, %v609_v32  ;;  %v924_v17 = vadd.f32 -3.0, %v610_v43 }
 0x1de   :  { %v925_v2 = vadd.f32 -3.0, %v611_v3  ;;  %v587_v15 = vmul.f32 %v1411_v44, %v551_v24  ;;  %v647_v30 = vmin.f32 %v919_v37, 6.0  ;;  %v648_v36 = vmin.f32 %v920_v21, 6.0 }
 0x1df   :  { %v649_v9 = vmin.f32 %v921_v25, 6.0  ;;  %v588_v49 = vmul.f32 %v1411_v44, %v552_v12  ;;  %v650_v51 = vmin.f32 %v922_v13, 6.0  ;;  %v651_v45 = vmin.f32 %v923_v33, 6.0 }
 0x1e0   :  { %v652_v53 = vmin.f32 %v924_v17, 6.0  ;;  %v653_v14 = vmin.f32 %v925_v2, 6.0  ;;  %v1420_v54 = vmul.f32 %v647_v30, %v605_v4  ;;  %v1422_v18 = vmul.f32 %v648_v36, %v606_v29 }
 0x1e1   :  { %v1418_v38 = vpop.permute.xlu1 %602  ;;  %v583_v60 = vmul.f32 %v565_v50, %v547_v56  ;;  %v589_v1 = vmul.f32 %v1411_v44, %v553_v42  ;;  %v1428_v28 = vmul.f32 %v649_v9, %v607_v26  ;;  %v584_v20 = vmul.f32 %v565_v50, %v548_v0 }
 0x1e2   :  { %v1426_v5 = vadd.f32 %v1418_v38, %v586_v40  ;;  %v1431_v24 = vadd.f32 %v1418_v38, %v587_v15  ;;  %v1434_v12 = vadd.f32 %v1418_v38, %v588_v49  ;;  %v1436_v23 = vmul.f32 %v650_v51, %v608_v47  ;;  %v1717_v40 = vld [vmem:[#allocation5_spill] sm:$0xff] }
 0x1e3   :  { %v710_v59 = vadd.f32 %v1422_v18, %v1420_v54  ;;  %v1440_v56 = vmul.f32 %v651_v45, %v609_v32  ;;  %v1442_v6 = vmul.f32 %v652_v53, %v610_v43  ;;  %v585_v52 = vmul.f32 %v565_v50, %v549_v62 }
 0x1e4   :  { %v614_v0 = vadd.f32 %v1384_v63, %v581_v31  ;;  %v674_v61 = vmul.f32 %v653_v14, %v611_v3  ;;  %v615_v10 = vadd.f32 %v1384_v63, %v582_v11  ;;  %v616_v46 = vadd.f32 %v1384_v63, %v583_v60 }
 0x1e5   :  { %v711_v42 = vadd.f32 %v710_v59, %v1428_v28  ;;  %v617_v57 = vadd.f32 %v1384_v63, %v584_v20  ;;  %v618_v4 = vadd.f32 %v1384_v63, %v585_v52  ;;  %v926_v29 = vadd.f32 -3.0, %v612_v16 }
 0x1e6   :  { %v927_v41 = vadd.f32 -3.0, %v613_v39  ;;  %v928_v26 = vadd.f32 -3.0, %v614_v0  ;;  %v929_v35 = vadd.f32 -3.0, %v615_v10  ;;  %v930_v34 = vadd.f32 -3.0, %v616_v46 }
 0x1e7   :  { %v712_v19 = vadd.f32 %v711_v42, %v1436_v23  ;;  %v931_v62 = vadd.f32 -3.0, %v617_v57  ;;  %v932_v50 = vadd.f32 -3.0, %v618_v4  ;;  %v654_v47 = vmin.f32 %v926_v29, 6.0 }
 0x1e8   :  { %v655_v31 = vmin.f32 %v927_v41, 6.0  ;;  %v656_v43 = vmin.f32 %v928_v26, 6.0  ;;  %v657_v3 = vmin.f32 %v929_v35, 6.0  ;;  %v658_v37 = vmin.f32 %v930_v34, 6.0 }
 0x1e9   :  { %v713_v32 = vadd.f32 %v712_v19, %v1440_v56  ;;  %v659_v21 = vmin.f32 %v931_v62, 6.0  ;;  %v660_v25 = vmin.f32 %v932_v50, 6.0  ;;  %v1455_v11 = vmul.f32 %v654_v47, %v612_v16 }
 0x1ea   :  { %v1457_v63 = vmul.f32 %v655_v31, %v613_v39  ;;  %v1460_v13 = vmul.f32 %v1717_v40, %v674_v61  ;;  %v1463_v17 = vmul.f32 %v656_v43, %v614_v0  ;;  %v1465_v2 = vmul.f32 %v657_v3, %v615_v10 }
 0x1eb   :  { %v714_v33 = vadd.f32 %v713_v32, %v1442_v6  ;;  %v933_v15 = vadd.f32 -3.0, %v1426_v5  ;;  %v681_v30 = vmul.f32 %v660_v25, %v618_v4  ;;  %v741_v16 = vmul.f32 %v1455_v11, %v1455_v11 }
 0x1ec   :  { %v718_v36 = vadd.f32 %v1457_v63, %v1455_v11  ;;  %v934_v39 = vadd.f32 -3.0, %v1431_v24  ;;  %v1474_v49 = vmul.f32 %v658_v37, %v616_v46  ;;  %v742_v51 = vmul.f32 %v1457_v63, %v1457_v63 }
 0x1ed   :  { %v715_v9 = vadd.f32 %v714_v33, %v1460_v13  ;;  %v1478_v45 = vmul.f32 %v659_v21, %v617_v57  ;;  %v743_v14 = vmul.f32 %v1463_v17, %v1463_v17  ;;  %v744_v60 = vmul.f32 %v1465_v2, %v1465_v2 }
 0x1ee   :  { %v719_v53 = vadd.f32 %v718_v36, %v1463_v17  ;;  %v763_v20 = vadd.f32 %v742_v51, %v741_v16  ;;  %v590_v59 = vmul.f32 %v1411_v44, %v554_v48  ;;  %v591_v52 = vmul.f32 %v1411_v44, %v555_v22 }
 0x1ef   :  { %716 = vadd.xlane.f32.xlu1 %v715_v9  ;;  %v592_v0 = vmul.f32 %v1411_v44, %v556_v55  ;;  %v1498_v61 = vmul.f32 %v1717_v40, %v681_v30  ;;  %v622_v10 = vadd.f32 %v1418_v38, %v589_v1  ;;  %v935_v8 = vadd.f32 -3.0, %v1434_v12 }
 0x1f0   :  { %v720_v42 = vadd.f32 %v719_v53, %v1465_v2  ;;  %v764_v48 = vadd.f32 %v763_v20, %v743_v14  ;;  %v623_v46 = vadd.f32 %v1418_v38, %v590_v59  ;;  %v624_v27 = vadd.f32 %v1418_v38, %v591_v52 }
 0x1f1   :  { %v625_v22 = vadd.f32 %v1418_v38, %v592_v0  ;;  %v936_v58 = vadd.f32 -3.0, %v622_v10  ;;  %v661_v55 = vmin.f32 %v933_v15, 6.0  ;;  %v662_v44 = vmin.f32 %v934_v39, 6.0 }
 0x1f2   :  { %v721_v7 = vadd.f32 %v720_v42, %v1474_v49  ;;  %v745_v57 = vmul.f32 %v1474_v49, %v1474_v49  ;;  %v765_v4 = vadd.f32 %v764_v48, %v744_v60  ;;  %v937_v29 = vadd.f32 -3.0, %v623_v46 }
 0x1f3   :  { %v939_v1 = vadd.f32 -3.0, %v625_v22  ;;  %v663_v19 = vmin.f32 %v935_v8, 6.0  ;;  %v1511_v26 = vmul.f32 %v661_v55, %v1426_v5  ;;  %v746_v38 = vmul.f32 %v1478_v45, %v1478_v45 }
 0x1f4   :  { %v722_v41 = vadd.f32 %v721_v7, %v1478_v45  ;;  %v766_v35 = vadd.f32 %v765_v4, %v745_v57  ;;  %v938_v34 = vadd.f32 -3.0, %v624_v27  ;;  %v664_v62 = vmin.f32 %v936_v58, 6.0 }
 0x1f5   :  { %v1517_v47 = vmul.f32 %v662_v44, %v1431_v24  ;;  %v747_v31 = vmul.f32 %v1498_v61, %v1498_v61  ;;  %v665_v43 = vmin.f32 %v937_v29, 6.0  ;;  %v667_v3 = vmin.f32 %v939_v1, 6.0 }
 0x1f6   :  { %v723_v50 = vadd.f32 %v722_v41, %v1498_v61  ;;  %v767_v32 = vadd.f32 %v766_v35, %v746_v38  ;;  %v1522_v5 = vmul.f32 %v663_v19, %v1434_v12  ;;  %v734_v21 = vmul.f32 %v1420_v54, %v1420_v54 }
 0x1f7   :  { %v726_v37 = vadd.f32 %v1517_v47, %v1511_v26  ;;  %v735_v24 = vmul.f32 %v1422_v18, %v1422_v18  ;;  %v666_v25 = vmin.f32 %v938_v34, 6.0  ;;  %v1530_v33 = vmul.f32 %v664_v62, %v622_v10  ;;  %v981_v62 = vld [vmem:[%s1683_s1] sm:$0xff] }
 0x1f8   :  { %724 = vadd.xlane.f32.xlu0 %v723_v50  ;;  %v768_v15 = vadd.f32 %v767_v32, %v747_v31  ;;  %v736_v36 = vmul.f32 %v1428_v28, %v1428_v28  ;;  %v1535_v16 = vmul.f32 %v665_v43, %v623_v46  ;;  %v748_v39 = vmul.f32 %v1511_v26, %v1511_v26  ;;  %v982_v50 = vld [vmem:[%s1683_s1 + $0x8] sm:$0xff] }
 0x1f9   :  { %v727_v30 = vadd.f32 %v726_v37, %v1522_v5  ;;  %v755_v12 = vadd.f32 %v735_v24, %v734_v21  ;;  %v749_v9 = vmul.f32 %v1517_v47, %v1517_v47  ;;  %v688_v51 = vmul.f32 %v667_v3, %v625_v22 }
 0x1fa   :  { %v737_v14 = vmul.f32 %v1436_v23, %v1436_v23  ;;  %v750_v20 = vmul.f32 %v1522_v5, %v1522_v5  ;;  %v1546_v52 = vmul.f32 %v666_v25, %v624_v27  ;;  %v738_v42 = vmul.f32 %v1440_v56, %v1440_v56 }
 0x1fb   :  { %v728_v53 = vadd.f32 %v727_v30, %v1530_v33  ;;  %v756_v60 = vadd.f32 %v755_v12, %v736_v36  ;;  %v771_v59 = vadd.f32 %v749_v9, %v748_v39  ;;  %v751_v8 = vmul.f32 %v1530_v33, %v1530_v33 }
 0x1fc   :  { %769 = vadd.xlane.f32.xlu0 %v768_v15  ;;  %v1554_v46 = vmul.f32 %v1717_v40, %v688_v51  ;;  %v739_v7 = vmul.f32 %v1442_v6, %v1442_v6  ;;  %v752_v58 = vmul.f32 %v1535_v16, %v1535_v16  ;;  %v740_v29 = vmul.f32 %v1460_v13, %v1460_v13 }
 0x1fd   :  { %v729_v0 = vadd.f32 %v728_v53, %v1535_v16  ;;  %v757_v10 = vadd.f32 %v756_v60, %v737_v14  ;;  %v772_v48 = vadd.f32 %v771_v59, %v750_v20  ;;  %v753_v40 = vmul.f32 %v1546_v52, %v1546_v52 }
 0x1fe   :  { %v754_v19 = vmul.f32 %v1554_v46, %v1554_v46  ;;  %v992_v35 = vmov 8   ;;  %v993_v34 = vmov 7  }
 0x1ff   :  { %v730_v22 = vadd.f32 %v729_v0, %v1546_v52  ;;  %v758_v27 = vadd.f32 %v757_v10, %v738_v42  ;;  %v773_v55 = vadd.f32 %v772_v48, %v751_v8  ;;  %965 = vset.pattern.permute.xlu1 %v992_v35  ;;  %964 = vset.pattern.permute.xlu0 %v993_v34 }
 0x201   :  { %v731_v44 = vadd.f32 %v730_v22, %v1554_v46  ;;  %v759_v57 = vadd.f32 %v758_v27, %v739_v7  ;;  %v774_v4 = vadd.f32 %v773_v55, %v752_v58  ;;  %v983_v7 = vld [vmem:[%s1683_s1 + $0x10] sm:$0xff] }
 0x203   :  { %732 = vadd.xlane.f32.xlu1 %v731_v44  ;;  %v760_v1 = vadd.f32 %v759_v57, %v740_v29  ;;  %v775_v41 = vadd.f32 %v774_v4, %v753_v40 }
 0x205   :  { %v776_v38 = vadd.f32 %v775_v41, %v754_v19 }
 0x207   :  { %761 = vadd.xlane.f32.xlu1 %v760_v1 }
 0x20b   :  { %777 = vadd.xlane.f32.xlu1 %v776_v38 }
 0x21c   :  { %858 = vperm.xlu1 %965, %v981_v62  }
 0x220   :  { %862 = vperm.xlu1 %965, %v982_v50  }
 0x224   :  { %966 = vset.pattern.permute.xlu1 %v993_v34 }
 0x278   :  { %v717_v24 = vpop.xlane.xlu1 %716 }
 0x279   :  { %v1574_v30 = vmul.f32 0.00125, %v717_v24 }
 0x27b   :  { %v785_v39 = vmul.f32 %v1574_v30, %v1574_v30  ;;  %v804_v24 = vsub.f32 %v1440_v56, %v1574_v30 }
 0x281   :  { %v725_v31 = vpop.xlane.xlu0 %724 }
 0x282   :  { %v780_v32 = vmul.f32 0.00125, %v725_v31 }
 0x284   :  { %v786_v3 = vmul.f32 %v780_v32, %v780_v32  ;;  %v807_v44 = vsub.f32 %v1455_v11, %v780_v32  ;;  %v808_v57 = vsub.f32 %v1457_v63, %v780_v32  ;;  %v809_v4 = vsub.f32 %v1463_v17, %v780_v32 }
 0x285   :  { %v770_v43 = vpop.xlane.xlu0 %769  ;;  %v810_v29 = vsub.f32 %v1465_v2, %v780_v32  ;;  %v811_v40 = vsub.f32 %v1474_v49, %v780_v32  ;;  %v812_v1 = vsub.f32 %v1478_v45, %v780_v32  ;;  %v813_v41 = vsub.f32 %v1498_v61, %v780_v32 }
 0x286   :  { %v783_v37 = vmul.f32 0.00125, %v770_v43  ;;  %v800_v49 = vsub.f32 %v1420_v54, %v1574_v30  ;;  %v801_v45 = vsub.f32 %v1422_v18, %v1574_v30  ;;  %v802_v61 = vsub.f32 %v1428_v28, %v1574_v30 }
 0x287   :  { %v803_v32 = vsub.f32 %v1436_v23, %v1574_v30 }
 0x288   :  { %v789_v21 = vsub.f32 %v783_v37, %v786_v3 }
 0x28a   :  { %v792_v25 = vadd.f32 1e-05, %v789_v21 }
 0x28c   :  { %975 = vrsqrt.f32 %v792_v25  ;;  %v733_v15 = vpop.xlane.xlu1 %732  ;;  %v805_v25 = vsub.f32 %v1442_v6, %v1574_v30 }
 0x28d   :  { %v1576_v12 = vmul.f32 0.00125, %v733_v15  ;;  %v806_v15 = vsub.f32 %v1460_v13, %v1574_v30 }
 0x28f   :  { %v787_v60 = vmul.f32 %v1576_v12, %v1576_v12  ;;  %v814_v6 = vsub.f32 %v1511_v26, %v1576_v12  ;;  %v815_v13 = vsub.f32 %v1517_v47, %v1576_v12  ;;  %v816_v30 = vsub.f32 %v1522_v5, %v1576_v12 }
 0x290   :  { %v762_v36 = vpop.xlane.xlu1 %761 }
 0x291   :  { %v782_v9 = vmul.f32 0.00125, %v762_v36 }
 0x293   :  { %v788_v51 = vsub.f32 %v782_v9, %v785_v39 }
 0x294   :  { %v778_v53 = vpop.xlane.xlu1 %777 }
 0x295   :  { %v791_v14 = vadd.f32 1e-05, %v788_v51  ;;  %v784_v20 = vmul.f32 0.00125, %v778_v53 }
 0x297   :  { %977 = vrsqrt.f32 %v791_v14  ;;  %v790_v59 = vsub.f32 %v784_v20, %v787_v60 }
 0x298   :  { %v859_v58 = vpop.permute.xlu1 %858 }
 0x299   :  { %v976_v0 = vpop.eup %975  ;;  %v793_v42 = vadd.f32 1e-05, %v790_v59 }
 0x29a   :  { %v798_v10 = vmul.f32 %v982_v50, %v976_v0 }
 0x29b   :  { %979 = vrsqrt.f32 %v793_v42 }
 0x29c   :  { %828 = vperm.xlu1 %966, %v798_v10   ;;  %v863_v55 = vpop.permute.xlu1 %862  ;;  %v817_v10 = vsub.f32 %v1530_v33, %v1576_v12 }
 0x2a4   :  { %v978_v8 = vpop.eup %977 }
 0x2a5   :  { %v797_v48 = vmul.f32 %v981_v62, %v978_v8  ;;  %v818_v8 = vsub.f32 %v1535_v16, %v1576_v12 }
 0x2a7   :  { %823 = vperm.xlu0 %964, %v797_v48   ;;  %v819_v48 = vsub.f32 %v1546_v52, %v1576_v12 }
 0x2a8   :  { %v980_v22 = vpop.eup %979 }
 0x2a9   :  { %v799_v27 = vmul.f32 %v983_v7, %v980_v22  ;;  %v820_v22 = vsub.f32 %v1554_v46, %v1576_v12 }
 0x2ab   :  { %833 = vperm.xlu1 %966, %v799_v27   ;;  %968 = vset.pattern.permute.xlu0 %v992_v35 }
 0x2af   :  { %967 = vset.pattern.permute.xlu1 %v992_v35 }
 0x2b0   :  { %866 = vperm.xlu1 %967, %v983_v7  }
 0x317   :  { %v829_v19 = vpop.permute.xlu1 %828 }
 0x318   :  { %v843_v38 = vmul.f32 %v829_v19, %v807_v44  ;;  %v844_v35 = vmul.f32 %v829_v19, %v808_v57  ;;  %v845_v34 = vmul.f32 %v829_v19, %v809_v4  ;;  %v846_v62 = vmul.f32 %v829_v19, %v810_v29 }
 0x319   :  { %v847_v50 = vmul.f32 %v829_v19, %v811_v40  ;;  %v848_v31 = vmul.f32 %v829_v19, %v812_v1  ;;  %v849_v11 = vmul.f32 %v829_v19, %v813_v41 }
 0x31a   :  { %v876_v43 = vadd.f32 %v863_v55, %v843_v38  ;;  %v877_v63 = vadd.f32 %v863_v55, %v844_v35  ;;  %v878_v3 = vadd.f32 %v863_v55, %v845_v34  ;;  %v879_v17 = vadd.f32 %v863_v55, %v846_v62 }
 0x31b   :  { %v880_v37 = vadd.f32 %v863_v55, %v847_v50  ;;  %v881_v2 = vadd.f32 %v863_v55, %v848_v31  ;;  %v882_v21 = vadd.f32 %v863_v55, %v849_v11 }
 0x31c   :  { %897 = vst [vmem:[%s1685_s2 + $0x38] sm:$0xff] %v876_v43  ;;  %898 = vst [vmem:[%s1685_s2 + $0x40] sm:$0xff] %v877_v63 }
 0x31d   :  { %899 = vst [vmem:[%s1685_s2 + $0x48] sm:$0xff] %v878_v3  ;;  %900 = vst [vmem:[%s1685_s2 + $0x50] sm:$0xff] %v879_v17 }
 0x31e   :  { %901 = vst [vmem:[%s1685_s2 + $0x58] sm:$0xff] %v880_v37  ;;  %902 = vst [vmem:[%s1685_s2 + $0x60] sm:$0xff] %v881_v2 }
 0x31f   :  { %903 = vst [vmem:[%s1685_s2 + $0x68] sm:$0xff] %v882_v21 }
 0x322   :  { %v824_v36 = vpop.permute.xlu0 %823 }
 0x323   :  { %v836_v54 = vmul.f32 %v824_v36, %v800_v49  ;;  %v837_v39 = vmul.f32 %v824_v36, %v801_v45  ;;  %v838_v9 = vmul.f32 %v824_v36, %v802_v61  ;;  %v839_v18 = vmul.f32 %v824_v36, %v803_v32 }
 0x324   :  { %v840_v51 = vmul.f32 %v824_v36, %v804_v24  ;;  %v841_v53 = vmul.f32 %v824_v36, %v805_v25  ;;  %v842_v28 = vmul.f32 %v824_v36, %v806_v15 }
 0x325   :  { %v869_v14 = vadd.f32 %v859_v58, %v836_v54  ;;  %v870_v60 = vadd.f32 %v859_v58, %v837_v39  ;;  %v871_v23 = vadd.f32 %v859_v58, %v838_v9  ;;  %v872_v20 = vadd.f32 %v859_v58, %v839_v18 }
 0x326   :  { %v873_v59 = vadd.f32 %v859_v58, %v840_v51  ;;  %v874_v56 = vadd.f32 %v859_v58, %v841_v53  ;;  %v875_v0 = vadd.f32 %v859_v58, %v842_v28  ;;  %v834_v42 = vpop.permute.xlu1 %833 }
 0x327   :  { %890 = vst [vmem:[%s1685_s2] sm:$0xff] %v869_v14  ;;  %891 = vst [vmem:[%s1685_s2 + $0x8] sm:$0xff] %v870_v60  ;;  %v850_v7 = vmul.f32 %v834_v42, %v814_v6  ;;  %v851_v26 = vmul.f32 %v834_v42, %v815_v13  ;;  %v852_v27 = vmul.f32 %v834_v42, %v816_v30 }
 0x328   :  { %892 = vst [vmem:[%s1685_s2 + $0x10] sm:$0xff] %v871_v23  ;;  %893 = vst [vmem:[%s1685_s2 + $0x18] sm:$0xff] %v872_v20  ;;  %v853_v58 = vmul.f32 %v834_v42, %v817_v10  ;;  %v854_v47 = vmul.f32 %v834_v42, %v818_v8  ;;  %v855_v55 = vmul.f32 %v834_v42, %v819_v48 }
 0x329   :  { %894 = vst [vmem:[%s1685_s2 + $0x20] sm:$0xff] %v873_v59  ;;  %895 = vst [vmem:[%s1685_s2 + $0x28] sm:$0xff] %v874_v56  ;;  %v856_v44 = vmul.f32 %v834_v42, %v820_v22 }
 0x32a   :  { %896 = vst [vmem:[%s1685_s2 + $0x30] sm:$0xff] %v875_v0 }
 0x32b   :  { %v867_v5 = vpop.permute.xlu1 %866 }
 0x32c   :  { %v883_v57 = vadd.f32 %v867_v5, %v850_v7  ;;  %v884_v4 = vadd.f32 %v867_v5, %v851_v26  ;;  %v885_v33 = vadd.f32 %v867_v5, %v852_v27  ;;  %v886_v29 = vadd.f32 %v867_v5, %v853_v58 }
 0x32d   :  { %v887_v40 = vadd.f32 %v867_v5, %v854_v47  ;;  %v888_v16 = vadd.f32 %v867_v5, %v855_v55  ;;  %v889_v1 = vadd.f32 %v867_v5, %v856_v44 }
 0x32e   :  { %904 = vst [vmem:[%s1685_s2 + $0x70] sm:$0x3] %v883_v57  ;;  %905 = vst [vmem:[%s1685_s2 + $0x78] sm:$0x3] %v884_v4 }
 0x32f   :  { %906 = vst [vmem:[%s1685_s2 + $0x80] sm:$0x3] %v885_v33  ;;  %907 = vst [vmem:[%s1685_s2 + $0x88] sm:$0x3] %v886_v29 }
 0x330   :  { %908 = vst [vmem:[%s1685_s2 + $0x90] sm:$0x3] %v887_v40  ;;  %909 = vst [vmem:[%s1685_s2 + $0x98] sm:$0x3] %v888_v16 }
 0x331   :  { %910 = vst [vmem:[%s1685_s2 + $0xa0] sm:$0x3] %v889_v1 }

</bundles_post_ra>
